<compile_context>
chip_gen: v7x
topology: tpu7x:2x2x1
jax: 0.10.0
libtpu: 0.0.40
codegen_flags: <defaults>
</compile_context>

<pallas_src>
import jax
import jax.numpy as jnp
from jax.experimental import pallas as pl
from jax.experimental.pallas import tpu as pltpu

BN_EPS = 1e-5


def decoder_kernel(z_emb_ref, w1_ref, w2_ref, w3_ref, w31_ref, w4_ref,
                   gb_ref, b4_ref, out_ref):
    """gb_ref rows 0..3 = gamma (layers 1,2,3,3_1); rows 4..7 = beta."""

    def linear_bn_relu(h_f32, w_ref, layer_idx):
        # bf16 operands, f32 accumulation on the MXU.
        y = jnp.dot(h_f32.astype(jnp.bfloat16), w_ref[...],
                    preferred_element_type=jnp.float32)
        # BatchNorm1d (training mode): biased batch statistics over the batch axis.
        # The linear bias is omitted: (y + b) - mean(y + b) == y - mean(y).
        mean = jnp.mean(y, axis=0, keepdims=True)
        diff = y - mean
        var = jnp.mean(diff * diff, axis=0, keepdims=True)
        # Fused affine: 2 elementwise ops on the (B, h2) tensor instead of 4.
        gamma = gb_ref[layer_idx:layer_idx + 1, :]
        beta = gb_ref[layer_idx + 4:layer_idx + 5, :]
        scale = gamma * jax.lax.rsqrt(var + BN_EPS)
        shift = beta - mean * scale
        return jnp.maximum(y * scale + shift, 0.0)

    h = linear_bn_relu(z_emb_ref[...], w1_ref, 0)
    h = linear_bn_relu(h, w2_ref, 1)
    h = linear_bn_relu(h, w3_ref, 2)
    h = linear_bn_relu(h, w31_ref, 3)

    out_ref[...] = (jnp.dot(h.astype(jnp.bfloat16), w4_ref[...],
                            preferred_element_type=jnp.float32)
                    + b4_ref[...])


def decoder_forward(z, labels, params, y_dim):
    """z: (B, n_z) f32, labels: (B,) int32. Returns (B, n_input) f32."""
    del y_dim  # embedding table carries y_dim; gather is done here in XLA
    B = z.shape[0]

    # Embedding lookup as a gather (avoids a <8%-utilized K=10 MXU pass).
    z_emb = params["emb"][labels] * z

    # Pack the eight tiny (1, h2) BN affine vectors into one (8, h2) input.
    gb = jnp.concatenate(
        [params["g1"], params["g2"], params["g3"], params["g31"],
         params["be1"], params["be2"], params["be3"], params["be31"]], axis=0)

    # Lane-dense output: pad n_input up to a multiple of 128 if necessary.
    n_input = params["w4"].shape[1]
    n_out_pad = ((n_input + 127) // 128) * 128
    w4 = params["w4"]
    b4 = params["b4"]
    if n_out_pad != n_input:
        w4 = jnp.pad(w4, ((0, 0), (0, n_out_pad - n_input)))
        b4 = jnp.pad(b4, ((0, 0), (0, n_out_pad - n_input)))

    bf16 = lambda w: w.astype(jnp.bfloat16)
    inputs = (
        z_emb,
        bf16(params["w1"]), bf16(params["w2"]), bf16(params["w3"]),
        bf16(params["w31"]), bf16(w4),
        gb, b4,
    )

    vmem_spec = pl.BlockSpec(memory_space=pltpu.MemorySpace.VMEM)
    out = pl.pallas_call(
        decoder_kernel,
        out_shape=jax.ShapeDtypeStruct((B, n_out_pad), jnp.float32),
        in_specs=[vmem_spec] * len(inputs),
        out_specs=vmem_spec,
        compiler_params=pltpu.CompilerParams(
            vmem_limit_bytes=32 * 1024 * 1024),
    )(*inputs)

    if n_out_pad != n_input:
        out = out[:, :n_input]
    return out


def reference_forward(z, labels, params, y_dim):
    """Full-precision reference matching the PyTorch module (incl. linear biases)."""
    onehot = jax.nn.one_hot(labels, y_dim, dtype=jnp.float32)
    h = (onehot @ params["emb"]) * z

    def block(h, w, b, g, be):
        y = h @ w + b
        mean = jnp.mean(y, axis=0, keepdims=True)
        var = jnp.mean((y - mean) ** 2, axis=0, keepdims=True)
        return jnp.maximum(g * (y - mean) / jnp.sqrt(var + BN_EPS) + be, 0.0)

    h = block(h, params["w1"], params["b1"], params["g1"], params["be1"])
    h = block(h, params["w2"], params["b2"], params["g2"], params["be2"])
    h = block(h, params["w3"], params["b3"], params["g3"], params["be3"])
    h = block(h, params["w31"], params["b31"], params["g31"], params["be31"])
    return h @ params["w4"] + params["b4"]


def mixed_reference_forward(z, labels, params):
    """Plain-JAX mirror of the kernel's exact math path (bf16 matmuls, fused BN)."""
    z_emb = params["emb"][labels] * z

    def block(h, w, g, be):
        y = jnp.dot(h.astype(jnp.bfloat16), w.astype(jnp.bfloat16),
                    preferred_element_type=jnp.float32)
        mean = jnp.mean(y, axis=0, keepdims=True)
        var = jnp.mean((y - mean) ** 2, axis=0, keepdims=True)
        scale = g * jax.lax.rsqrt(var + BN_EPS)
        shift = be - mean * scale
        return jnp.maximum(y * scale + shift, 0.0)

    h = block(z_emb, params["w1"], params["g1"], params["be1"])
    h = block(h, params["w2"], params["g2"], params["be2"])
    h = block(h, params["w3"], params["g3"], params["be3"])
    h = block(h, params["w31"], params["g31"], params["be31"])
    return jnp.dot(h.astype(jnp.bfloat16), params["w4"].astype(jnp.bfloat16),
                   preferred_element_type=jnp.float32) + params["b4"]


def init_params(key, y_dim, n_z, dim_h, n_input):
    h2 = dim_h * 2
    ks = jax.random.split(key, 12)

    def lin(k, fan_in, fan_out):
        kw, kb = jax.random.split(k)
        w = jax.random.normal(kw, (fan_in, fan_out), jnp.float32) * 0.1
        b = jax.random.normal(kb, (1, fan_out), jnp.float32) * 0.1
        return w, b

    p = {}
    p["emb"] = jax.random.normal(ks[0], (y_dim, n_z), jnp.float32)
    p["w1"], p["b1"] = lin(ks[1], n_z, h2)
    p["w2"], p["b2"] = lin(ks[2], h2, h2)
    p["w3"], p["b3"] = lin(ks[3], h2, h2)
    p["w31"], p["b31"] = lin(ks[4], h2, h2)
    p["w4"], p["b4"] = lin(ks[5], h2, n_input)
    # BatchNorm affine params (PyTorch default init: gamma=1, beta=0)
    for name in ("1", "2", "3", "31"):
        p["g" + name] = jnp.ones((1, h2), jnp.float32)
        p["be" + name] = jnp.zeros((1, h2), jnp.float32)
    return p


if __name__ == "__main__":
    # small, self-consistent shapes
    B, y_dim, n_z, dim_h, n_input = 8, 10, 32, 32, 128

    key = jax.random.PRNGKey(0)
    kp, kz, kl = jax.random.split(key, 3)

    params = init_params(kp, y_dim, n_z, dim_h, n_input)
    z = jax.random.normal(kz, (B, n_z), jnp.float32)
    labels = jax.random.randint(kl, (B,), 0, y_dim, jnp.int32)

    out = decoder_forward(z, labels, params, y_dim)
    out = jax.block_until_ready(out)
    assert out.shape == (B, n_input)

    # Tight check against a plain-JAX mirror of the kernel's math path.
    ref_mixed = mixed_reference_forward(z, labels, params)
    assert jnp.allclose(out, ref_mixed, atol=5e-3, rtol=5e-3), (
        float(jnp.max(jnp.abs(out - ref_mixed))))

    # Looser check against the full-precision PyTorch-equivalent reference
    # (differences come only from bf16 matmul operands).
    ref_f32 = reference_forward(z, labels, params, y_dim)
    assert jnp.allclose(out, ref_f32, atol=5e-2, rtol=5e-2), (
        float(jnp.max(jnp.abs(out - ref_f32))))

    print("KERNEL_OK")
</pallas_src>

<mosaic_0001>
module attributes {stable_mosaic.version = 11 : i64} {
  func.func @decoder_kernel(%arg0: memref<8x32xf32, #tpu.memory_space<vmem>>, %arg1: memref<32x64xbf16, #tpu.memory_space<vmem>>, %arg2: memref<64x64xbf16, #tpu.memory_space<vmem>>, %arg3: memref<64x64xbf16, #tpu.memory_space<vmem>>, %arg4: memref<64x64xbf16, #tpu.memory_space<vmem>>, %arg5: memref<64x128xbf16, #tpu.memory_space<vmem>>, %arg6: memref<8x64xf32, #tpu.memory_space<vmem>>, %arg7: memref<1x128xf32, #tpu.memory_space<vmem>>, %arg8: memref<8x128xf32, #tpu.memory_space<vmem>>) attributes {dimension_semantics = [], scalar_prefetch = 0 : i64, scratch_operands = 0 : i64, tpu.core_type = #tpu.core_type<tc>} {
    %c0 = arith.constant 0 : index
    %c0_0 = arith.constant 0 : index
    %0 = vector.load %arg0[%c0, %c0_0] : memref<8x32xf32, #tpu.memory_space<vmem>>, vector<8x32xf32>
    %1 = arith.truncf %0 : vector<8x32xf32> to vector<8x32xbf16>
    %c0_1 = arith.constant 0 : index
    %c0_2 = arith.constant 0 : index
    %2 = vector.load %arg1[%c0_1, %c0_2] : memref<32x64xbf16, #tpu.memory_space<vmem>>, vector<32x64xbf16>
    %cst = arith.constant dense<0.000000e+00> : vector<8x64xf32>
    %3 = tpu.matmul %1, %2, %cst {dimension_numbers = #tpu.dot_dimension_numbers<[1], [0], [0], [1], [0, 0, 1, 1], [], []>} : vector<8x32xbf16>, vector<32x64xbf16>, vector<8x64xf32> -> vector<8x64xf32>
    %cst_3 = arith.constant dense<0.000000e+00> : vector<64xf32>
    %4 = vector.multi_reduction <add>, %3, %cst_3 [0] : vector<8x64xf32> to vector<64xf32>
    %5 = vector.shape_cast %4 : vector<64xf32> to vector<1x64xf32>
    %cst_4 = arith.constant 8.000000e+00 : f32
    %6 = vector.broadcast %cst_4 : f32 to vector<1x64xf32>
    %7 = arith.divf %5, %6 : vector<1x64xf32>
    %8 = vector.broadcast %7 : vector<1x64xf32> to vector<8x64xf32>
    %9 = arith.subf %3, %8 : vector<8x64xf32>
    %10 = arith.mulf %9, %9 : vector<8x64xf32>
    %cst_5 = arith.constant dense<0.000000e+00> : vector<64xf32>
    %11 = vector.multi_reduction <add>, %10, %cst_5 [0] : vector<8x64xf32> to vector<64xf32>
    %12 = vector.shape_cast %11 : vector<64xf32> to vector<1x64xf32>
    %cst_6 = arith.constant 8.000000e+00 : f32
    %13 = vector.broadcast %cst_6 : f32 to vector<1x64xf32>
    %14 = arith.divf %12, %13 : vector<1x64xf32>
    %c0_7 = arith.constant 0 : index
    %c0_8 = arith.constant 0 : index
    %15 = vector.load %arg6[%c0_7, %c0_8] : memref<8x64xf32, #tpu.memory_space<vmem>>, vector<1x64xf32>
    %c4 = arith.constant 4 : index
    %c0_9 = arith.constant 0 : index
    %16 = vector.load %arg6[%c4, %c0_9] : memref<8x64xf32, #tpu.memory_space<vmem>>, vector<1x64xf32>
    %cst_10 = arith.constant 9.99999974E-6 : f32
    %17 = vector.broadcast %cst_10 : f32 to vector<1x64xf32>
    %18 = arith.addf %14, %17 : vector<1x64xf32>
    %19 = math.rsqrt %18 : vector<1x64xf32>
    %20 = arith.mulf %15, %19 : vector<1x64xf32>
    %21 = arith.mulf %7, %20 : vector<1x64xf32>
    %22 = arith.subf %16, %21 : vector<1x64xf32>
    %23 = vector.broadcast %20 : vector<1x64xf32> to vector<8x64xf32>
    %24 = arith.mulf %3, %23 : vector<8x64xf32>
    %25 = vector.broadcast %22 : vector<1x64xf32> to vector<8x64xf32>
    %26 = arith.addf %24, %25 : vector<8x64xf32>
    %cst_11 = arith.constant 0.000000e+00 : f32
    %27 = vector.broadcast %cst_11 : f32 to vector<8x64xf32>
    %28 = arith.maximumf %26, %27 : vector<8x64xf32>
    %29 = arith.truncf %28 : vector<8x64xf32> to vector<8x64xbf16>
    %c0_12 = arith.constant 0 : index
    %c0_13 = arith.constant 0 : index
    %30 = vector.load %arg2[%c0_12, %c0_13] : memref<64x64xbf16, #tpu.memory_space<vmem>>, vector<64x64xbf16>
    %cst_14 = arith.constant dense<0.000000e+00> : vector<8x64xf32>
    %31 = tpu.matmul %29, %30, %cst_14 {dimension_numbers = #tpu.dot_dimension_numbers<[1], [0], [0], [1], [0, 0, 1, 1], [], []>} : vector<8x64xbf16>, vector<64x64xbf16>, vector<8x64xf32> -> vector<8x64xf32>
    %cst_15 = arith.constant dense<0.000000e+00> : vector<64xf32>
    %32 = vector.multi_reduction <add>, %31, %cst_15 [0] : vector<8x64xf32> to vector<64xf32>
    %33 = vector.shape_cast %32 : vector<64xf32> to vector<1x64xf32>
    %cst_16 = arith.constant 8.000000e+00 : f32
    %34 = vector.broadcast %cst_16 : f32 to vector<1x64xf32>
    %35 = arith.divf %33, %34 : vector<1x64xf32>
    %36 = vector.broadcast %35 : vector<1x64xf32> to vector<8x64xf32>
    %37 = arith.subf %31, %36 : vector<8x64xf32>
    %38 = arith.mulf %37, %37 : vector<8x64xf32>
    %cst_17 = arith.constant dense<0.000000e+00> : vector<64xf32>
    %39 = vector.multi_reduction <add>, %38, %cst_17 [0] : vector<8x64xf32> to vector<64xf32>
    %40 = vector.shape_cast %39 : vector<64xf32> to vector<1x64xf32>
    %cst_18 = arith.constant 8.000000e+00 : f32
    %41 = vector.broadcast %cst_18 : f32 to vector<1x64xf32>
    %42 = arith.divf %40, %41 : vector<1x64xf32>
    %c1 = arith.constant 1 : index
    %c0_19 = arith.constant 0 : index
    %43 = vector.load %arg6[%c1, %c0_19] : memref<8x64xf32, #tpu.memory_space<vmem>>, vector<1x64xf32>
    %c5 = arith.constant 5 : index
    %c0_20 = arith.constant 0 : index
    %44 = vector.load %arg6[%c5, %c0_20] : memref<8x64xf32, #tpu.memory_space<vmem>>, vector<1x64xf32>
    %cst_21 = arith.constant 9.99999974E-6 : f32
    %45 = vector.broadcast %cst_21 : f32 to vector<1x64xf32>
    %46 = arith.addf %42, %45 : vector<1x64xf32>
    %47 = math.rsqrt %46 : vector<1x64xf32>
    %48 = arith.mulf %43, %47 : vector<1x64xf32>
    %49 = arith.mulf %35, %48 : vector<1x64xf32>
    %50 = arith.subf %44, %49 : vector<1x64xf32>
    %51 = vector.broadcast %48 : vector<1x64xf32> to vector<8x64xf32>
    %52 = arith.mulf %31, %51 : vector<8x64xf32>
    %53 = vector.broadcast %50 : vector<1x64xf32> to vector<8x64xf32>
    %54 = arith.addf %52, %53 : vector<8x64xf32>
    %cst_22 = arith.constant 0.000000e+00 : f32
    %55 = vector.broadcast %cst_22 : f32 to vector<8x64xf32>
    %56 = arith.maximumf %54, %55 : vector<8x64xf32>
    %57 = arith.truncf %56 : vector<8x64xf32> to vector<8x64xbf16>
    %c0_23 = arith.constant 0 : index
    %c0_24 = arith.constant 0 : index
    %58 = vector.load %arg3[%c0_23, %c0_24] : memref<64x64xbf16, #tpu.memory_space<vmem>>, vector<64x64xbf16>
    %cst_25 = arith.constant dense<0.000000e+00> : vector<8x64xf32>
    %59 = tpu.matmul %57, %58, %cst_25 {dimension_numbers = #tpu.dot_dimension_numbers<[1], [0], [0], [1], [0, 0, 1, 1], [], []>} : vector<8x64xbf16>, vector<64x64xbf16>, vector<8x64xf32> -> vector<8x64xf32>
    %cst_26 = arith.constant dense<0.000000e+00> : vector<64xf32>
    %60 = vector.multi_reduction <add>, %59, %cst_26 [0] : vector<8x64xf32> to vector<64xf32>
    %61 = vector.shape_cast %60 : vector<64xf32> to vector<1x64xf32>
    %cst_27 = arith.constant 8.000000e+00 : f32
    %62 = vector.broadcast %cst_27 : f32 to vector<1x64xf32>
    %63 = arith.divf %61, %62 : vector<1x64xf32>
    %64 = vector.broadcast %63 : vector<1x64xf32> to vector<8x64xf32>
    %65 = arith.subf %59, %64 : vector<8x64xf32>
    %66 = arith.mulf %65, %65 : vector<8x64xf32>
    %cst_28 = arith.constant dense<0.000000e+00> : vector<64xf32>
    %67 = vector.multi_reduction <add>, %66, %cst_28 [0] : vector<8x64xf32> to vector<64xf32>
    %68 = vector.shape_cast %67 : vector<64xf32> to vector<1x64xf32>
    %cst_29 = arith.constant 8.000000e+00 : f32
    %69 = vector.broadcast %cst_29 : f32 to vector<1x64xf32>
    %70 = arith.divf %68, %69 : vector<1x64xf32>
    %c2 = arith.constant 2 : index
    %c0_30 = arith.constant 0 : index
    %71 = vector.load %arg6[%c2, %c0_30] : memref<8x64xf32, #tpu.memory_space<vmem>>, vector<1x64xf32>
    %c6 = arith.constant 6 : index
    %c0_31 = arith.constant 0 : index
    %72 = vector.load %arg6[%c6, %c0_31] : memref<8x64xf32, #tpu.memory_space<vmem>>, vector<1x64xf32>
    %cst_32 = arith.constant 9.99999974E-6 : f32
    %73 = vector.broadcast %cst_32 : f32 to vector<1x64xf32>
    %74 = arith.addf %70, %73 : vector<1x64xf32>
    %75 = math.rsqrt %74 : vector<1x64xf32>
    %76 = arith.mulf %71, %75 : vector<1x64xf32>
    %77 = arith.mulf %63, %76 : vector<1x64xf32>
    %78 = arith.subf %72, %77 : vector<1x64xf32>
    %79 = vector.broadcast %76 : vector<1x64xf32> to vector<8x64xf32>
    %80 = arith.mulf %59, %79 : vector<8x64xf32>
    %81 = vector.broadcast %78 : vector<1x64xf32> to vector<8x64xf32>
    %82 = arith.addf %80, %81 : vector<8x64xf32>
    %cst_33 = arith.constant 0.000000e+00 : f32
    %83 = vector.broadcast %cst_33 : f32 to vector<8x64xf32>
    %84 = arith.maximumf %82, %83 : vector<8x64xf32>
    %85 = arith.truncf %84 : vector<8x64xf32> to vector<8x64xbf16>
    %c0_34 = arith.constant 0 : index
    %c0_35 = arith.constant 0 : index
    %86 = vector.load %arg4[%c0_34, %c0_35] : memref<64x64xbf16, #tpu.memory_space<vmem>>, vector<64x64xbf16>
    %cst_36 = arith.constant dense<0.000000e+00> : vector<8x64xf32>
    %87 = tpu.matmul %85, %86, %cst_36 {dimension_numbers = #tpu.dot_dimension_numbers<[1], [0], [0], [1], [0, 0, 1, 1], [], []>} : vector<8x64xbf16>, vector<64x64xbf16>, vector<8x64xf32> -> vector<8x64xf32>
    %cst_37 = arith.constant dense<0.000000e+00> : vector<64xf32>
    %88 = vector.multi_reduction <add>, %87, %cst_37 [0] : vector<8x64xf32> to vector<64xf32>
    %89 = vector.shape_cast %88 : vector<64xf32> to vector<1x64xf32>
    %cst_38 = arith.constant 8.000000e+00 : f32
    %90 = vector.broadcast %cst_38 : f32 to vector<1x64xf32>
    %91 = arith.divf %89, %90 : vector<1x64xf32>
    %92 = vector.broadcast %91 : vector<1x64xf32> to vector<8x64xf32>
    %93 = arith.subf %87, %92 : vector<8x64xf32>
    %94 = arith.mulf %93, %93 : vector<8x64xf32>
    %cst_39 = arith.constant dense<0.000000e+00> : vector<64xf32>
    %95 = vector.multi_reduction <add>, %94, %cst_39 [0] : vector<8x64xf32> to vector<64xf32>
    %96 = vector.shape_cast %95 : vector<64xf32> to vector<1x64xf32>
    %cst_40 = arith.constant 8.000000e+00 : f32
    %97 = vector.broadcast %cst_40 : f32 to vector<1x64xf32>
    %98 = arith.divf %96, %97 : vector<1x64xf32>
    %c3 = arith.constant 3 : index
    %c0_41 = arith.constant 0 : index
    %99 = vector.load %arg6[%c3, %c0_41] : memref<8x64xf32, #tpu.memory_space<vmem>>, vector<1x64xf32>
    %c7 = arith.constant 7 : index
    %c0_42 = arith.constant 0 : index
    %100 = vector.load %arg6[%c7, %c0_42] : memref<8x64xf32, #tpu.memory_space<vmem>>, vector<1x64xf32>
    %cst_43 = arith.constant 9.99999974E-6 : f32
    %101 = vector.broadcast %cst_43 : f32 to vector<1x64xf32>
    %102 = arith.addf %98, %101 : vector<1x64xf32>
    %103 = math.rsqrt %102 : vector<1x64xf32>
    %104 = arith.mulf %99, %103 : vector<1x64xf32>
    %105 = arith.mulf %91, %104 : vector<1x64xf32>
    %106 = arith.subf %100, %105 : vector<1x64xf32>
    %107 = vector.broadcast %104 : vector<1x64xf32> to vector<8x64xf32>
    %108 = arith.mulf %87, %107 : vector<8x64xf32>
    %109 = vector.broadcast %106 : vector<1x64xf32> to vector<8x64xf32>
    %110 = arith.addf %108, %109 : vector<8x64xf32>
    %cst_44 = arith.constant 0.000000e+00 : f32
    %111 = vector.broadcast %cst_44 : f32 to vector<8x64xf32>
    %112 = arith.maximumf %110, %111 : vector<8x64xf32>
    %113 = arith.truncf %112 : vector<8x64xf32> to vector<8x64xbf16>
    %c0_45 = arith.constant 0 : index
    %c0_46 = arith.constant 0 : index
    %114 = vector.load %arg5[%c0_45, %c0_46] : memref<64x128xbf16, #tpu.memory_space<vmem>>, vector<64x128xbf16>
    %cst_47 = arith.constant dense<0.000000e+00> : vector<8x128xf32>
    %115 = tpu.matmul %113, %114, %cst_47 {dimension_numbers = #tpu.dot_dimension_numbers<[1], [0], [0], [1], [0, 0, 1, 1], [], []>} : vector<8x64xbf16>, vector<64x128xbf16>, vector<8x128xf32> -> vector<8x128xf32>
    %c0_48 = arith.constant 0 : index
    %c0_49 = arith.constant 0 : index
    %116 = vector.load %arg7[%c0_48, %c0_49] : memref<1x128xf32, #tpu.memory_space<vmem>>, vector<1x128xf32>
    %117 = vector.broadcast %116 : vector<1x128xf32> to vector<8x128xf32>
    %118 = arith.addf %115, %117 : vector<8x128xf32>
    %c0_50 = arith.constant 0 : index
    %c0_51 = arith.constant 0 : index
    %119 = vector.load %arg8[%c0_50, %c0_51] : memref<8x128xf32, #tpu.memory_space<vmem>>, vector<8x128xf32>
    tpu.vector_store %arg8[%c0_50, %c0_51], %118 {strides = array<i32>} : memref<8x128xf32, #tpu.memory_space<vmem>>, vector<8x128xf32>,
    return
  }
}

</mosaic_0001>

<bundles_post_ra>
// kernel: tpu_custom_call.1
= control target key start
LH: loop header
LB: loop body
LE: loop exit
PB: predicated region body
PF: predicated region fallthrough
CT: control target
= control target key end

     0   :  { %13 = vsyncpa [#allocation3], 0  ;;  %s1185_s0 = inlined_call_operand.hbm [shape: f32[8,32], index: 0, kind: input, shape index: {}]   ;;  %s1186_s1 = inlined_call_operand.hbm [shape: bf16[32,64], index: 1, kind: input, shape index: {}]   ;;  %s1187_s2 = inlined_call_operand.hbm [shape: bf16[64,64], index: 2, kind: input, shape index: {}]   ;;  %s1188_s3 = inlined_call_operand.hbm [shape: bf16[64,64], index: 3, kind: input, shape index: {}]   ;;  %s1189_s4 = inlined_call_operand.hbm [shape: bf16[64,64], index: 4, kind: input, shape index: {}]   ;;  %s1190_s5 = inlined_call_operand.hbm [shape: bf16[64,128], index: 5, kind: input, shape index: {}]   ;;  %s1191_s6 = inlined_call_operand.vmem [shape: f32[8,64], index: 6, kind: input, shape index: {}]   ;;  %s1192_s7 = inlined_call_operand.vmem [shape: f32[1,128], index: 7, kind: input, shape index: {}]   ;;  %s1193_s8 = inlined_call_operand.hbm [shape: f32[8,128], index: 8, kind: output, shape index: {}]  }
   0x1   :  { %14 = vsyncpa [#allocation6], 0 }
   0x2   :  { %15 = vsyncpa [#allocation9], 0 }
   0x3   :  { %16 = vsyncpa [#allocation12], 0 }
   0x4   :  { %17 = vsyncpa [#allocation4], 0  ;;  %s953_s27 = smov [#allocation5]   ;;  %s789_s9 = scalar_lea.hbm %s1186_s1, 256 }
   0x5   :  { %s33_s28 = sshll.u32 %s953_s27, 4  ;;  %p790_p0 = scmp.ne.s32.totalorder %s1186_s1, %s789_s9  ;;  %s34_s28 = int_to_ptr.vmem [resolvable:$true] %s33_s28 }
   0x6   :  { %p793_p1 = scmp.lt.u32.totalorder %s789_s9, %s1186_s1 }
   0x8   :  { %p795_p2 = pnand %p793_p1, %p790_p0 }
   0xa   :  { %798 = shalt.err (!%p795_p2)
}
   0xb   :  { %s799_s14 = scalar_lea.vmem %s34_s28, 256  ;;  %p804_p4 = scmp.lt.s32.totalorder %s34_s28, %s34_s28 }
   0xc   :  { %p800_p3 = scmp.ne.s32.totalorder %s34_s28, %s799_s14  ;;  %p805_p5 = scmp.lt.s32.totalorder %s799_s14, %s799_s14 }
   0xe   :  { %p806_p6 = por %p805_p5, %p804_p4 }
  0x10   :  { %p807_p7 = pnand %p806_p6, %p800_p3 }
  0x12   :  { %810 = shalt.err (!%p807_p7)
}
  0x13   :  { %s954_s15 = smov 64   ;;  %s955_s16 = smov 4  }
  0x14   :  { %39 = dma.hbm_to_vmem [thread:$0]  %s1186_s1, 256, %s34_s28, [#allocation6], %s954_s15, %s954_s15, %s955_s16  }
  0x15   :  { %s956_s19 = smov [#allocation8]   ;;  %s957_s21 = smov [#allocation2]  }
  0x16   :  { %s57_s20 = sshll.u32 %s956_s19, 4  ;;  %s24_s22 = sshll.u32 %s957_s21, 4  ;;  %s58_s20 = int_to_ptr.vmem [resolvable:$true] %s57_s20  ;;  %s25_s22 = int_to_ptr.vmem [resolvable:$true] %s24_s22 }
  0x17   :  { %s811_s25 = scalar_lea.hbm %s1188_s3, 512 }
  0x18   :  { %p812_p8 = scmp.ne.s32.totalorder %s1188_s3, %s811_s25  ;;  %p815_p9 = scmp.lt.u32.totalorder %s811_s25, %s1188_s3 }
  0x1a   :  { %p817_p10 = pnand %p815_p9, %p812_p8 }
  0x1c   :  { %820 = shalt.err (!%p817_p10)
}
  0x1d   :  { %s821_s1 = scalar_lea.vmem %s58_s20, 512  ;;  %p826_p12 = scmp.lt.s32.totalorder %s58_s20, %s58_s20 }
  0x1e   :  { %p822_p11 = scmp.ne.s32.totalorder %s58_s20, %s821_s1  ;;  %p827_p13 = scmp.lt.s32.totalorder %s821_s1, %s821_s1 }
  0x20   :  { %p828_p0 = por %p827_p13, %p826_p12 }
  0x22   :  { %p829_p1 = pnand %p828_p0, %p822_p11 }
  0x24   :  { %832 = shalt.err (!%p829_p1)
}
  0x25   :  { %63 = dma.hbm_to_vmem [thread:$0]  %s1188_s3, 512, %s58_s20, [#allocation9], %s954_s15, %s954_s15, %s955_s16  }
  0x26   :  { %s833_s12 = scalar_lea.hbm %s1185_s0, 128 }
  0x27   :  { %p834_p2 = scmp.ne.s32.totalorder %s1185_s0, %s833_s12  ;;  %p837_p3 = scmp.lt.u32.totalorder %s833_s12, %s1185_s0 }
  0x29   :  { %p839_p4 = pnand %p837_p3, %p834_p2 }
  0x2b   :  { %842 = shalt.err (!%p839_p4)
}
  0x2c   :  { %s843_s19 = scalar_lea.vmem %s25_s22, 128  ;;  %p848_p6 = scmp.lt.s32.totalorder %s25_s22, %s25_s22 }
  0x2d   :  { %p844_p5 = scmp.ne.s32.totalorder %s25_s22, %s843_s19  ;;  %p849_p7 = scmp.lt.s32.totalorder %s843_s19, %s843_s19 }
  0x2f   :  { %p850_p8 = por %p849_p7, %p848_p6 }
  0x31   :  { %p851_p9 = pnand %p850_p8, %p844_p5 }
  0x33   :  { %854 = shalt.err (!%p851_p9)
}
  0x34   :  { %27 = dma.hbm_to_vmem [thread:$0]  %s1185_s0, 128, %s25_s22, [#allocation3]  }
  0x35   :  { %s958_s21 = smov [#allocation7]   ;;  %s959_s24 = smov [#allocation10]  }
  0x36   :  { %s45_s23 = sshll.u32 %s958_s21, 4  ;;  %s69_s25 = sshll.u32 %s959_s24, 4  ;;  %s46_s23 = int_to_ptr.vmem [resolvable:$true] %s45_s23  ;;  %s70_s25 = int_to_ptr.vmem [resolvable:$true] %s69_s25 }
  0x37   :  { %s855_s29 = scalar_lea.hbm %s1187_s2, 512 }
  0x38   :  { %p856_p10 = scmp.ne.s32.totalorder %s1187_s2, %s855_s29  ;;  %p859_p11 = scmp.lt.u32.totalorder %s855_s29, %s1187_s2 }
  0x3a   :  { %p861_p12 = pnand %p859_p11, %p856_p10 }
  0x3c   :  { %864 = shalt.err (!%p861_p12)
}
  0x3d   :  { %s865_s0 = scalar_lea.vmem %s46_s23, 512  ;;  %p870_p0 = scmp.lt.s32.totalorder %s46_s23, %s46_s23 }
  0x3e   :  { %p866_p13 = scmp.ne.s32.totalorder %s46_s23, %s865_s0  ;;  %p871_p1 = scmp.lt.s32.totalorder %s865_s0, %s865_s0 }
  0x40   :  { %p872_p2 = por %p871_p1, %p870_p0 }
  0x42   :  { %p873_p3 = pnand %p872_p2, %p866_p13 }
  0x44   :  { %876 = shalt.err (!%p873_p3)
}
  0x45   :  { %51 = dma.hbm_to_vmem [thread:$0]  %s1187_s2, 512, %s46_s23, [#allocation6], %s954_s15, %s954_s15, %s955_s16  }
  0x46   :  { %s877_s13 = scalar_lea.hbm %s1189_s4, 512 }
  0x47   :  { %p878_p4 = scmp.ne.s32.totalorder %s1189_s4, %s877_s13  ;;  %p881_p5 = scmp.lt.u32.totalorder %s877_s13, %s1189_s4 }
  0x49   :  { %p883_p6 = pnand %p881_p5, %p878_p4 }
  0x4b   :  { %886 = shalt.err (!%p883_p6)
}
  0x4c   :  { %s887_s3 = scalar_lea.vmem %s70_s25, 512  ;;  %p892_p8 = scmp.lt.s32.totalorder %s70_s25, %s70_s25 }
  0x4d   :  { %p888_p7 = scmp.ne.s32.totalorder %s70_s25, %s887_s3  ;;  %p893_p9 = scmp.lt.s32.totalorder %s887_s3, %s887_s3 }
  0x4f   :  { %p894_p10 = por %p893_p9, %p892_p8 }
  0x51   :  { %p895_p11 = pnand %p894_p10, %p888_p7 }
  0x53   :  { %898 = shalt.err (!%p895_p11)
}
  0x54   :  { %75 = dma.hbm_to_vmem [thread:$0]  %s1189_s4, 512, %s70_s25, [#allocation9], %s954_s15, %s954_s15, %s955_s16  }
  0x55   :  { %s960_s21 = smov [#allocation11]   ;;  %s899_s27 = scalar_lea.hbm %s1190_s5, 512 }
  0x56   :  { %s81_s23 = sshll.u32 %s960_s21, 4  ;;  %p900_p12 = scmp.ne.s32.totalorder %s1190_s5, %s899_s27  ;;  %s82_s23 = int_to_ptr.vmem [resolvable:$true] %s81_s23 }
  0x57   :  { %p903_p13 = scmp.lt.u32.totalorder %s899_s27, %s1190_s5 }
  0x59   :  { %p905_p0 = pnand %p903_p13, %p900_p12 }
  0x5b   :  { %908 = shalt.err (!%p905_p0)
}
  0x5c   :  { %s909_s9 = scalar_lea.vmem %s82_s23, 512  ;;  %p914_p2 = scmp.lt.s32.totalorder %s82_s23, %s82_s23 }
  0x5d   :  { %p910_p1 = scmp.ne.s32.totalorder %s82_s23, %s909_s9  ;;  %p915_p3 = scmp.lt.s32.totalorder %s909_s9, %s909_s9 }
  0x5f   :  { %p916_p4 = por %p915_p3, %p914_p2 }
  0x61   :  { %p917_p5 = pnand %p916_p4, %p910_p1 }
  0x63   :  { %920 = shalt.err (!%p917_p5)
}
  0x64   :  { %87 = dma.hbm_to_vmem [thread:$0]  %s1190_s5, 512, %s82_s23, [#allocation12], %s954_s15, %s954_s15, %s955_s16  }
  0x65   :  { %943 = dma.done.wait [#allocation3], 128  }
  0x66   :  { %944 = vsyncadd [#allocation3], 4294967168 }
  0x67   :  { %945 = dma.done.wait [#allocation6], 768  }
  0x68   :  { %946 = vsyncadd [#allocation6], 4294966528 }
  0x69   :  { %947 = dma.done.wait [#allocation9], 1024  }
  0x6a   :  { %948 = vsyncadd [#allocation9], 4294966272 }
  0x6b   :  { %949 = dma.done.wait [#allocation12], 512  }
  0x6c   :  { %950 = vsyncadd [#allocation12], 4294966784  ;;  %v961_v0 = vmov 0.0   ;;  %vm962_vm0 = vmmov 0   ;;  %v763_v1 = vld [vmem:[#allocation5] sm:$0xff]   ;;  %v764_v2 = vld [vmem:[#allocation5 + $0x8] sm:$0xff]   ;;  %v200_v32 = vlaneseq }
  0x6d   :  { %696 = vmatprep.subr.bf16.mxu0 %v961_v0  ;;  %700 = vmatprep.mubr.msk.bf16.mxu0 %vm962_vm0, %v961_v0  ;;  %v111_v3 = vld [vmem:[#allocation2] sm:$0xff]  ;;  %vm129_vm1 = vcmask 261120   ;;  %v765_v5 = vld [vmem:[#allocation7] sm:$0xff]   ;;  %v767_v7 = vld [vmem:[#allocation7 + $0x10] sm:$0xff]   ;;  %vm173_vm2 = vcmask 523264   ;;  %s963_s24 = smov [#allocation13]  }
  0x6e   :  { %704 = vmatprep.subr.bf16.mxu1 %v961_v0  ;;  %712 = vmatprep.mubr.msk.bf16.mxu1 %vm962_vm0, %v961_v0  ;;  %v112_v4 = vpack.c.bf16 %v111_v3, %v111_v3  ;;  %v766_v6 = vld [vmem:[#allocation7 + $0x8] sm:$0xff]   ;;  %v768_v8 = vld [vmem:[#allocation7 + $0x18] sm:$0xff]   ;;  %v201_v33 = vshrl.u32 %v200_v32, 7  ;;  %v769_v47 = vld [vmem:[#allocation8] sm:$0xff]   ;;  %s637_s26 = sshll.u32 %s963_s24, 4  ;;  %s638_s26 = int_to_ptr.vmem [resolvable:$true] %s637_s26 }
  0x6f   :  { %697 = vmatpush3.bf16.msra.mxu0 %v763_v1  ;;  %705 = vmatpush3.bf16.msra.mxu1 %v765_v5  ;;  %v193_v34 = vld [vmem:[%s1191_s6] sm:$0x1]  ;;  %v194_v38 = vld [vmem:[%s1191_s6 + $0x4] sm:$0x1]  ;;  %v771_v49 = vld [vmem:[#allocation8 + $0x10] sm:$0xff]   ;;  %p926_p7 = scmp.lt.s32.totalorder %s638_s26, %s638_s26 }
  0x70   :  { %698 = vmatprep.subr.bf16.mxu0 %v961_v0  ;;  %706 = vmatprep.subr.bf16.mxu1 %v961_v0  ;;  %v1115_v35 = vsub.s32 0, %v201_v33  ;;  %v770_v48 = vld [vmem:[#allocation8 + $0x8] sm:$0xff]   ;;  %v772_v50 = vld [vmem:[#allocation8 + $0x18] sm:$0xff]  }
  0x73   :  { %699 = vmatpush3.bf16.msra.mxu0 %v764_v2  ;;  %707 = vmatpush3.bf16.msra.mxu1 %v766_v6 }
  0x74   :  { %716 = vmatprep.subr.bf16.mxu0 %v961_v0  ;;  %708 = vmatprep.subr.bf16.mxu1 %v961_v0 }
  0x76   :  { %701 = vmatmul.mubr.msk.bf16.vlgmr.msra.gmra.mrb[0].mxu0 %vm129_vm1, %v112_v4 }
  0x77   :  { %724 = vmatprep.mubr.msk.bf16.mxu0 %vm962_vm0, %v961_v0  ;;  %709 = vmatpush3.bf16.msra.mxu1 %v767_v7 }
  0x78   :  { %710 = vmatprep.subr.bf16.mxu1 %v961_v0  ;;  %717 = vmatpush3.bf16.msra.mxu0 %v769_v47 }
  0x79   :  { %718 = vmatprep.subr.bf16.mxu0 %v961_v0 }
  0x7b   :  { %711 = vmatpush3.bf16.msra.mxu1 %v768_v8 }
  0x7c   :  { %728 = vmatprep.subr.bf16.mxu1 %v961_v0  ;;  %719 = vmatpush3.bf16.msra.mxu0 %v770_v48 }
  0x7d   :  { %720 = vmatprep.subr.bf16.mxu0 %v961_v0 }
  0x80   :  { %721 = vmatpush3.bf16.msra.mxu0 %v771_v49 }
  0x81   :  { %722 = vmatprep.subr.bf16.mxu0 %v961_v0 }
  0x84   :  { %723 = vmatpush3.bf16.msra.mxu0 %v772_v50 }
  0x85   :  { %740 = vmatprep.subr.bf16.mxu0 %v961_v0 }
 0x149   :  { %v167_v9 = vpop.f32.mrb[0].mxu0 }
 0x14a   :  { %v174_v10 = vsel %vm173_vm2, %v167_v9, 0.0  ;;  %v702_v11 = vpop.f32.mrb[1].mxu0 }
 0x14b   :  { %v175_v12 = vrot.slane %v174_v10, 4  ;;  %v170_v13 = vpop.f32.mrb[2].mxu0  ;;  %v305_v11 = vld [vmem:[%s1191_s6 + $0x1] sm:$0x1] }
 0x14c   :  { %v703_v14 = vpop.f32.mrb[3].mxu0 }
 0x14d   :  { %v176_v15 = vadd.f32 %v175_v12, %v174_v10  ;;  %v306_v14 = vld [vmem:[%s1191_s6 + $0x5] sm:$0x1] }
 0x14f   :  { %v177_v16 = vrot.slane %v176_v15, 2 }
 0x151   :  { %v178_v17 = vadd.f32 %v177_v16, %v176_v15 }
 0x153   :  { %v179_v18 = vrot.slane %v178_v17, 1 }
 0x155   :  { %v180_v19 = vadd.f32 %v179_v18, %v178_v17 }
 0x157   :  { %v182_v20 = vmul.f32 0.125, %v180_v19 }
 0x159   :  { %v183_v21 = vsub.f32 %v167_v9, %v182_v20 }
 0x15b   :  { %v184_v22 = vmul.f32 %v183_v21, %v183_v21 }
 0x15d   :  { %v185_v23 = vsel %vm173_vm2, %v184_v22, 0.0 }
 0x15e   :  { %v186_v24 = vrot.slane %v185_v23, 4 }
 0x160   :  { %v187_v25 = vadd.f32 %v186_v24, %v185_v23  ;;  %v773_v23 = vld [vmem:[#allocation10] sm:$0xff]   ;;  %v774_v24 = vld [vmem:[#allocation10 + $0x8] sm:$0xff]  }
 0x162   :  { %v188_v26 = vrot.slane %v187_v25, 2 }
 0x164   :  { %v189_v27 = vadd.f32 %v188_v26, %v187_v25  ;;  %v775_v25 = vld [vmem:[#allocation10 + $0x10] sm:$0xff]   ;;  %v776_v26 = vld [vmem:[#allocation10 + $0x18] sm:$0xff]  }
 0x166   :  { %v190_v28 = vrot.slane %v189_v27, 1 }
 0x168   :  { %v191_v29 = vadd.f32 %v190_v28, %v189_v27 }
 0x16a   :  { %v192_v30 = vmul.f32 0.125, %v191_v29 }
 0x16c   :  { %v195_v31 = vadd.f32 1e-05, %v192_v30 }
 0x16e   :  { %781 = vrsqrt.f32 %v195_v31 }
 0x178   :  { %v782_v36 = vpop.eup %781 }
 0x179   :  { %v197_v37 = vmul.f32 %v782_v36, %v193_v34 }
 0x17b   :  { %v198_v39 = vmul.f32 %v197_v37, %v182_v20  ;;  %v203_v40 = vrot.slane %v197_v37, %v1115_v35 }
 0x17d   :  { %v199_v41 = vsub.f32 %v194_v38, %v198_v39  ;;  %v204_v42 = vmul.f32 %v203_v40, %v167_v9 }
 0x17f   :  { %v208_v43 = vrot.slane %v199_v41, %v1115_v35 }
 0x181   :  { %v209_v44 = vadd.f32 %v208_v43, %v204_v42 }
 0x183   :  { %v210_v45 = vmax.f32 %v209_v44, 0.0 }
 0x185   :  { %v211_v46 = vpack.c.bf16 %v210_v45, %v210_v45 }
 0x187   :  { %713 = vmatmul.mubr.msk.bf16.vlgmr.msra.gmra.mrb[0].mxu1 %vm173_vm2, %v211_v46 }
 0x188   :  { %736 = vmatprep.mubr.msk.bf16.mxu1 %vm962_vm0, %v961_v0  ;;  %729 = vmatpush3.bf16.msra.mxu1 %v773_v23 }
 0x189   :  { %730 = vmatprep.subr.bf16.mxu1 %v961_v0 }
 0x18c   :  { %731 = vmatpush3.bf16.msra.mxu1 %v774_v24 }
 0x18d   :  { %732 = vmatprep.subr.bf16.mxu1 %v961_v0 }
 0x190   :  { %733 = vmatpush3.bf16.msra.mxu1 %v775_v25 }
 0x191   :  { %734 = vmatprep.subr.bf16.mxu1 %v961_v0 }
 0x194   :  { %735 = vmatpush3.bf16.msra.mxu1 %v776_v26  ;;  %v529_v26 = vld [vmem:[%s1191_s6 + $0x3] sm:$0x1] }
 0x25a   :  { %v281_v51 = vpop.f32.mrb[0].mxu1 }
 0x25b   :  { %v287_v52 = vsel %vm173_vm2, %v281_v51, 0.0  ;;  %v714_v53 = vpop.f32.mrb[1].mxu1 }
 0x25c   :  { %v288_v54 = vrot.slane %v287_v52, 4  ;;  %v284_v55 = vpop.f32.mrb[2].mxu1 }
 0x25d   :  { %v715_v56 = vpop.f32.mrb[3].mxu1 }
 0x25e   :  { %v289_v57 = vadd.f32 %v288_v54, %v287_v52  ;;  %v418_v54 = vld [vmem:[%s1191_s6 + $0x6] sm:$0x1] }
 0x260   :  { %v290_v58 = vrot.slane %v289_v57, 2 }
 0x262   :  { %v291_v59 = vadd.f32 %v290_v58, %v289_v57 }
 0x264   :  { %v292_v60 = vrot.slane %v291_v59, 1 }
 0x266   :  { %v293_v61 = vadd.f32 %v292_v60, %v291_v59 }
 0x268   :  { %v294_v62 = vmul.f32 0.125, %v293_v61 }
 0x26a   :  { %v295_v63 = vsub.f32 %v281_v51, %v294_v62 }
 0x26c   :  { %v296_v1 = vmul.f32 %v295_v63, %v295_v63  ;;  %v777_v63 = vld [vmem:[#allocation11] sm:$0xff]  }
 0x26e   :  { %v297_v2 = vsel %vm173_vm2, %v296_v1, 0.0  ;;  %v778_v1 = vld [vmem:[#allocation11 + $0x8] sm:$0xff]  }
 0x26f   :  { %v298_v3 = vrot.slane %v297_v2, 4 }
 0x271   :  { %v299_v4 = vadd.f32 %v298_v3, %v297_v2  ;;  %v779_v2 = vld [vmem:[#allocation11 + $0x10] sm:$0xff]   ;;  %v780_v3 = vld [vmem:[#allocation11 + $0x18] sm:$0xff]  }
 0x273   :  { %v300_v5 = vrot.slane %v299_v4, 2 }
 0x275   :  { %v301_v6 = vadd.f32 %v300_v5, %v299_v4 }
 0x277   :  { %v302_v7 = vrot.slane %v301_v6, 1 }
 0x279   :  { %v303_v8 = vadd.f32 %v302_v7, %v301_v6 }
 0x27b   :  { %v304_v9 = vmul.f32 0.125, %v303_v8 }
 0x27d   :  { %v307_v10 = vadd.f32 1e-05, %v304_v9 }
 0x27f   :  { %783 = vrsqrt.f32 %v307_v10 }
 0x289   :  { %v784_v12 = vpop.eup %783 }
 0x28a   :  { %v309_v13 = vmul.f32 %v784_v12, %v305_v11 }
 0x28c   :  { %v310_v15 = vmul.f32 %v309_v13, %v294_v62  ;;  %v315_v16 = vrot.slane %v309_v13, %v1115_v35 }
 0x28e   :  { %v311_v17 = vsub.f32 %v306_v14, %v310_v15  ;;  %v316_v18 = vmul.f32 %v315_v16, %v281_v51  ;;  %v417_v51 = vld [vmem:[%s1191_s6 + $0x2] sm:$0x1] }
 0x290   :  { %v320_v19 = vrot.slane %v311_v17, %v1115_v35 }
 0x292   :  { %v321_v20 = vadd.f32 %v320_v19, %v316_v18 }
 0x294   :  { %v322_v21 = vmax.f32 %v321_v20, 0.0 }
 0x296   :  { %v323_v22 = vpack.c.bf16 %v322_v21, %v322_v21 }
 0x298   :  { %725 = vmatmul.mubr.msk.bf16.vlgmr.msra.gmra.mrb[4].mxu0 %vm173_vm2, %v323_v22 }
 0x299   :  { %748 = vmatprep.mubr.msk.bf16.mxu0 %vm962_vm0, %v961_v0  ;;  %741 = vmatpush3.bf16.msra.mxu0 %v777_v63 }
 0x29a   :  { %742 = vmatprep.subr.bf16.mxu0 %v961_v0 }
 0x29d   :  { %743 = vmatpush3.bf16.msra.mxu0 %v778_v1 }
 0x29e   :  { %744 = vmatprep.subr.bf16.mxu0 %v961_v0 }
 0x2a1   :  { %745 = vmatpush3.bf16.msra.mxu0 %v779_v2 }
 0x2a2   :  { %746 = vmatprep.subr.bf16.mxu0 %v961_v0 }
 0x2a5   :  { %747 = vmatpush3.bf16.msra.mxu0 %v780_v3 }
 0x36b   :  { %v393_v27 = vpop.f32.mrb[4].mxu0 }
 0x36c   :  { %v399_v28 = vsel %vm173_vm2, %v393_v27, 0.0  ;;  %v726_v29 = vpop.f32.mrb[5].mxu0 }
 0x36d   :  { %v400_v30 = vrot.slane %v399_v28, 4  ;;  %v396_v31 = vpop.f32.mrb[6].mxu0  ;;  %v530_v29 = vld [vmem:[%s1191_s6 + $0x7] sm:$0x1]  ;;  %s921_s6 = scalar_lea.vmem %s638_s26, 128 }
 0x36e   :  { %v727_v32 = vpop.f32.mrb[7].mxu0  ;;  %p922_p6 = scmp.ne.s32.totalorder %s638_s26, %s921_s6  ;;  %p927_p8 = scmp.lt.s32.totalorder %s921_s6, %s921_s6 }
 0x36f   :  { %v401_v33 = vadd.f32 %v400_v30, %v399_v28 }
 0x370   :  { %p928_p9 = por %p927_p8, %p926_p7 }
 0x371   :  { %v402_v34 = vrot.slane %v401_v33, 2 }
 0x372   :  { %p929_p10 = pnand %p928_p9, %p922_p6 }
 0x373   :  { %v403_v36 = vadd.f32 %v402_v34, %v401_v33 }
 0x375   :  { %v404_v37 = vrot.slane %v403_v36, 1 }
 0x377   :  { %v405_v38 = vadd.f32 %v404_v37, %v403_v36 }
 0x379   :  { %v406_v39 = vmul.f32 0.125, %v405_v38 }
 0x37b   :  { %v407_v40 = vsub.f32 %v393_v27, %v406_v39 }
 0x37d   :  { %v408_v41 = vmul.f32 %v407_v40, %v407_v40 }
 0x37f   :  { %v409_v42 = vsel %vm173_vm2, %v408_v41, 0.0 }
 0x380   :  { %v410_v43 = vrot.slane %v409_v42, 4 }
 0x382   :  { %v411_v44 = vadd.f32 %v410_v43, %v409_v42 }
 0x384   :  { %v412_v45 = vrot.slane %v411_v44, 2 }
 0x386   :  { %v413_v46 = vadd.f32 %v412_v45, %v411_v44 }
 0x388   :  { %v414_v47 = vrot.slane %v413_v46, 1 }
 0x38a   :  { %v415_v48 = vadd.f32 %v414_v47, %v413_v46 }
 0x38c   :  { %v416_v49 = vmul.f32 0.125, %v415_v48 }
 0x38e   :  { %v419_v50 = vadd.f32 1e-05, %v416_v49 }
 0x390   :  { %785 = vrsqrt.f32 %v419_v50 }
 0x39a   :  { %v786_v52 = vpop.eup %785 }
 0x39b   :  { %v421_v53 = vmul.f32 %v786_v52, %v417_v51 }
 0x39d   :  { %v422_v55 = vmul.f32 %v421_v53, %v406_v39  ;;  %v427_v56 = vrot.slane %v421_v53, %v1115_v35  ;;  %v667_v39 = vld [vmem:[%s1192_s7] ss:$0 sm:$0xff] }
 0x39f   :  { %v423_v57 = vsub.f32 %v418_v54, %v422_v55  ;;  %v428_v58 = vmul.f32 %v427_v56, %v393_v27 }
 0x3a1   :  { %v432_v59 = vrot.slane %v423_v57, %v1115_v35 }
 0x3a3   :  { %v433_v60 = vadd.f32 %v432_v59, %v428_v58 }
 0x3a5   :  { %v434_v61 = vmax.f32 %v433_v60, 0.0 }
 0x3a7   :  { %v435_v62 = vpack.c.bf16 %v434_v61, %v434_v61 }
 0x3a9   :  { %737 = vmatmul.mubr.msk.bf16.vlgmr.msra.gmra.mrb[4].mxu1 %vm173_vm2, %v435_v62 }
 0x47c   :  { %v505_v4 = vpop.f32.mrb[4].mxu1 }
 0x47d   :  { %v511_v5 = vsel %vm173_vm2, %v505_v4, 0.0  ;;  %v738_v6 = vpop.f32.mrb[5].mxu1 }
 0x47e   :  { %v512_v7 = vrot.slane %v511_v5, 4  ;;  %v508_v8 = vpop.f32.mrb[6].mxu1 }
 0x47f   :  { %v739_v9 = vpop.f32.mrb[7].mxu1 }
 0x480   :  { %v513_v10 = vadd.f32 %v512_v7, %v511_v5 }
 0x482   :  { %v514_v11 = vrot.slane %v513_v10, 2 }
 0x484   :  { %v515_v12 = vadd.f32 %v514_v11, %v513_v10 }
 0x486   :  { %v516_v13 = vrot.slane %v515_v12, 1 }
 0x488   :  { %v517_v14 = vadd.f32 %v516_v13, %v515_v12 }
 0x48a   :  { %v518_v15 = vmul.f32 0.125, %v517_v14 }
 0x48c   :  { %v519_v16 = vsub.f32 %v505_v4, %v518_v15 }
 0x48e   :  { %v520_v17 = vmul.f32 %v519_v16, %v519_v16 }
 0x490   :  { %v521_v18 = vsel %vm173_vm2, %v520_v17, 0.0 }
 0x491   :  { %v522_v0 = vrot.slane %v521_v18, 4 }
 0x493   :  { %v523_v19 = vadd.f32 %v522_v0, %v521_v18 }
 0x495   :  { %v524_v20 = vrot.slane %v523_v19, 2 }
 0x497   :  { %v525_v21 = vadd.f32 %v524_v20, %v523_v19 }
 0x499   :  { %v526_v22 = vrot.slane %v525_v21, 1 }
 0x49b   :  { %v527_v23 = vadd.f32 %v526_v22, %v525_v21 }
 0x49d   :  { %v528_v24 = vmul.f32 0.125, %v527_v23 }
 0x49f   :  { %v531_v25 = vadd.f32 1e-05, %v528_v24 }
 0x4a1   :  { %787 = vrsqrt.f32 %v531_v25 }
 0x4ab   :  { %v788_v27 = vpop.eup %787 }
 0x4ac   :  { %v533_v28 = vmul.f32 %v788_v27, %v529_v26 }
 0x4ae   :  { %v534_v30 = vmul.f32 %v533_v28, %v518_v15  ;;  %v539_v31 = vrot.slane %v533_v28, %v1115_v35 }
 0x4b0   :  { %v535_v32 = vsub.f32 %v530_v29, %v534_v30  ;;  %v540_v33 = vmul.f32 %v539_v31, %v505_v4 }
 0x4b2   :  { %v544_v34 = vrot.slane %v535_v32, %v1115_v35 }
 0x4b4   :  { %v545_v36 = vadd.f32 %v544_v34, %v540_v33 }
 0x4b6   :  { %v546_v37 = vmax.f32 %v545_v36, 0.0 }
 0x4b8   :  { %v547_v38 = vpack.c.bf16 %v546_v37, %v546_v37 }
 0x4ba   :  { %749 = vmatmul.mubr.msk.bf16.vlgmr.msra.gmra.mrb[8].mxu0 %vm173_vm2, %v547_v38 }
 0x58d   :  { %v624_v40 = vpop.f32.mrb[8].mxu0 }
 0x58e   :  { %v625_v41 = vadd.f32 %v667_v39, %v624_v40  ;;  %v750_v42 = vpop.f32.mrb[9].mxu0 }
 0x58f   :  { %v627_v43 = vpop.f32.mrb[10].mxu0 }
 0x590   :  { %630 = vst [vmem:[#allocation13] sm:$0xff] %v625_v41  ;;  %v751_v44 = vpop.f32.mrb[11].mxu0 }
 0x591   :  { %932 = shalt.err (!%p929_p10)
}
 0x592   :  { %s933_s7 = scalar_lea.hbm %s1193_s8, 128 }
 0x593   :  { %p934_p11 = scmp.ne.s32.totalorder %s1193_s8, %s933_s7  ;;  %p937_p12 = scmp.lt.u32.totalorder %s933_s7, %s1193_s8 }
 0x595   :  { %p939_p13 = pnand %p937_p12, %p934_p11 }
 0x597   :  { %942 = shalt.err (!%p939_p13)
}
 0x598   :  { %640 = dma.vmem_to_hbm [thread:$0]  %s638_s26, 128, %s1193_s8, [#allocation4]  }
 0x599   :  { %951 = dma.done.wait [#allocation4], 128  }
 0x59a   :  { %952 = vsyncadd [#allocation4], 4294967168 }
 0x59b   :  { %644 = vsyncpa [#allocation3], 1 }
 0x59c   :  { %645 = vsyncpa [#allocation6], 1 }
 0x59d   :  { %646 = vsyncpa [#allocation9], 1 }
 0x59e   :  { %647 = vsyncpa [#allocation12], 1 }
 0x59f   :  { %648 = vsyncpa [#allocation4], 1 }

</bundles_post_ra>
